<compile_context>
chip_gen: v7x
topology: tpu7x:2x2x1
jax: 0.10.0
libtpu: 0.0.40
codegen_flags: <defaults>
</compile_context>

<pallas_src>
import jax
import jax.numpy as jnp
from jax import lax
from jax.experimental import pallas as pl
from jax.experimental.pallas import tpu as pltpu
import numpy as np

# Hyperparameters (small, consistent with the module's __init__)
LATENT = 4            # latent_size
INPUT = 32            # input_size
HIDDEN = 32           # rnn_hidden_size
N_GAUSS = 5           # n_gaussians
N_REWARDS = 3         # nb_discrete_rewards
N_LAYERS = 1          # n_layers

GL = N_GAUSS * LATENT              # 20
OUTW = 3 * GL + N_REWARDS + 1      # 64 = head-slab width
HC_OFF = OUTW                      # lanes [64, 128) of rows 0..B-1 hold [h | c]
SLAB_W = 128                       # lane-dense output width (unmasked stores)


def mdnrnn_kernel(x_ref, h0_ref, c0_ref,
                  wih_ref, whh_ref, b_ref,
                  wh_ref, bh_ref,
                  out_ref,
                  xw_sc):
    """x_ref: (T*B, I) time-major rows; out_ref: (T*B, 128) fused output slab."""
    TB, _ = x_ref.shape
    B, H = h0_ref.shape
    T = TB // B

    # ---- input projection for ALL timesteps at once (off the serial path) ----
    # Spilled to a lane-dense (T*B, 4H) VMEM scratch so the per-step slice is a
    # vector load (vld slots are idle) rather than a vreg sublane extract.
    xw_sc[...] = (jnp.dot(x_ref[...], wih_ref[...],
                          preferred_element_type=jnp.float32)
                  + b_ref[...])                              # b = b_ih + b_hh

    whh = whh_ref[...]                                       # (H, 4H), load once

    # ---- LSTM recurrence (PyTorch gate order: i, f, g, o), fully unrolled ----
    # TODO(synk): hold W_hh stationary in the MXU across the unrolled steps via
    # pltpu.matmul_push_rhs / matmul_acc_lhs / matmul_pop once the MRF (v5e/v6e
    # FIFO) vs MRB (v7x addressed accumulator) pop/reset semantics are
    # validated on hardware; jnp.dot re-pushes the (32,128) weight every step.
    h = h0_ref[...]
    c = c0_ref[...]
    hs = []
    for t in range(T):                                       # T static -> unrolled
        gates = xw_sc[t * B:(t + 1) * B, :] + jnp.dot(
            h, whh, preferred_element_type=jnp.float32)      # (B, 4H)
        sig = jax.nn.sigmoid(gates)        # one full-tile EUP pass -> i, f, o
        tnh = jnp.tanh(gates)              # one full-tile EUP pass -> g
        c = sig[:, H:2 * H] * c + sig[:, 0:H] * tnh[:, 2 * H:3 * H]
        h = sig[:, 3 * H:4 * H] * jnp.tanh(c)
        hs.append(h)                       # stays in vregs; no per-step store

    ys = jnp.concatenate(hs, axis=0)       # (T*B, H), single sublane concat

    # ---- fused output heads: single (T*B, H) @ (H, 64) MXU push ----
    heads = (jnp.dot(ys, wh_ref[...], preferred_element_type=jnp.float32)
             + bh_ref[...])                                  # (T*B, 64)
    # column layout: [pi(20) | mu(20) | logsigma(20) | reward(3) | done(1)]

    # MDN mixture weights: log_softmax over the gaussian axis, done with static
    # lane slices (no (..., G, L) reshape). One full-width exp + one full-width
    # subtract; max/sum reductions over the 5 groups stay narrow.
    pi = heads[:, 0:GL]
    m = pi[:, 0:LATENT]
    for g in range(1, N_GAUSS):
        m = jnp.maximum(m, pi[:, g * LATENT:(g + 1) * LATENT])
    m_b = jnp.concatenate([m] * N_GAUSS, axis=1)             # (T*B, GL)
    e = jnp.exp(pi - m_b)                                    # ONE EUP pass
    s = e[:, 0:LATENT]
    for g in range(1, N_GAUSS):
        s = s + e[:, g * LATENT:(g + 1) * LATENT]
    lse_b = jnp.concatenate([m + jnp.log(s)] * N_GAUSS, axis=1)
    logpi = pi - lse_b                                       # ONE full-width sub

    # reward head: numerically-stable softmax over the 3 reward classes
    r = heads[:, 3 * GL:3 * GL + N_REWARDS]
    r = r - jnp.max(r, axis=-1, keepdims=True)
    er = jnp.exp(r)
    prob_r = er / jnp.sum(er, axis=-1, keepdims=True)        # (T*B, 3)

    # done head: sigmoid
    prob_d = jax.nn.sigmoid(heads[:, 3 * GL + N_REWARDS:])   # (T*B, 1)

    # pack final (h, c) into the spare lanes (rows 0..B-1, lanes 64..127) so the
    # kernel has exactly ONE unmasked 128-lane-wide output writeback.
    hc = jnp.concatenate([h, c], axis=1)                     # (B, 2H) = (B, 64)
    hc_pad = jnp.concatenate(
        [hc, jnp.zeros((TB - B, 2 * H), jnp.float32)], axis=0)   # (T*B, 64)

    out_ref[...] = jnp.concatenate(
        [logpi, heads[:, GL:3 * GL], prob_r, prob_d, hc_pad], axis=1)


def make_params(key):
    ks = jax.random.split(key, 10)
    s = 1.0 / float(np.sqrt(HIDDEN))
    u = lambda k, shape: jax.random.uniform(k, shape, jnp.float32, -s, s)
    return dict(
        w_ih=u(ks[0], (INPUT, 4 * HIDDEN)),    # LSTM weight_ih (transposed)
        w_hh=u(ks[1], (HIDDEN, 4 * HIDDEN)),   # LSTM weight_hh (transposed)
        b_ih=u(ks[2], (1, 4 * HIDDEN)),
        b_hh=u(ks[3], (1, 4 * HIDDEN)),
        w1=u(ks[4], (HIDDEN, 3 * GL)),         # fc1 (transposed)
        b1=u(ks[5], (1, 3 * GL)),
        wr=u(ks[6], (HIDDEN, N_REWARDS)),      # fc_reward (transposed)
        br=u(ks[7], (1, N_REWARDS)),
        wd=u(ks[8], (HIDDEN, 1)),              # fc_done (transposed)
        bd=u(ks[9], (1, 1)),
    )


@jax.jit
def mdnrnn_forward(x, h, params):
    """x: (B, T, INPUT) float32; h: (2, n_layers, B, HIDDEN) as in init_hidden."""
    B, T, _ = x.shape
    H = HIDDEN

    # time-major flattened rows: row t*B + b  ==  x[b, t]
    x_flat = jnp.transpose(x, (1, 0, 2)).reshape(T * B, INPUT)
    h0 = h[0, 0]                            # (B, H)
    c0 = h[1, 0]                            # (B, H)
    b = params['b_ih'] + params['b_hh']     # combined LSTM bias (1, 4H)

    # fuse the three head projections into one (H, 64) matrix + one bias
    w_heads = jnp.concatenate([params['w1'], params['wr'], params['wd']], axis=1)
    b_heads = jnp.concatenate([params['b1'], params['br'], params['bd']], axis=1)

    vmem = pl.BlockSpec(memory_space=pltpu.MemorySpace.VMEM)
    slab = pl.pallas_call(
        mdnrnn_kernel,
        out_shape=jax.ShapeDtypeStruct((T * B, SLAB_W), jnp.float32),
        in_specs=[vmem] * 8,
        out_specs=vmem,
        scratch_shapes=[pltpu.VMEM((T * B, 4 * HIDDEN), jnp.float32)],  # xw spill
    )(x_flat, h0, c0,
      params['w_ih'], params['w_hh'], b,
      w_heads, b_heads)

    # layout plumbing only: slice the fused slab.
    h_out = slab[:B, HC_OFF:HC_OFF + H]                 # final h (B, H)
    c_out = slab[:B, HC_OFF + H:HC_OFF + 2 * H]         # final c (B, H)
    heads = slab[:, :OUTW].reshape(T, B, OUTW).transpose(1, 0, 2)   # (B, T, 64)
    logpi = heads[..., 0:GL].reshape(B, T, N_GAUSS, LATENT)
    mu = heads[..., GL:2 * GL].reshape(B, T, N_GAUSS, LATENT)
    logsig = heads[..., 2 * GL:3 * GL].reshape(B, T, N_GAUSS, LATENT)
    prob_r = heads[..., 3 * GL:3 * GL + N_REWARDS]
    prob_d = heads[..., 3 * GL + N_REWARDS:3 * GL + N_REWARDS + 1]
    return prob_r, prob_d, (logpi, mu, logsig), (h_out[None], c_out[None])


def reference_forward(x, h, params):
    """Pure-JAX reference mirroring the PyTorch module semantics."""
    B, T, _ = x.shape
    H = HIDDEN
    h0, c0 = h[0, 0], h[1, 0]
    b = (params['b_ih'] + params['b_hh'])[0]

    def step(carry, x_t):
        hh, cc = carry
        gates = x_t @ params['w_ih'] + hh @ params['w_hh'] + b
        i = jax.nn.sigmoid(gates[:, :H])
        f = jax.nn.sigmoid(gates[:, H:2 * H])
        g = jnp.tanh(gates[:, 2 * H:3 * H])
        o = jax.nn.sigmoid(gates[:, 3 * H:])
        cc = f * cc + i * g
        hh = o * jnp.tanh(cc)
        return (hh, cc), hh

    (hN, cN), ys = lax.scan(step, (h0, c0), jnp.transpose(x, (1, 0, 2)))
    y = jnp.transpose(ys, (1, 0, 2))                      # (B, T, H)
    prob_r = jax.nn.softmax(y @ params['wr'] + params['br'][0], axis=-1)
    prob_d = jax.nn.sigmoid(y @ params['wd'] + params['bd'][0])
    y1 = y @ params['w1'] + params['b1'][0]
    pi = y1[..., :GL].reshape(B, T, N_GAUSS, LATENT)
    mu = y1[..., GL:2 * GL].reshape(B, T, N_GAUSS, LATENT)
    ls = y1[..., 2 * GL:].reshape(B, T, N_GAUSS, LATENT)
    logpi = jax.nn.log_softmax(pi, axis=2)
    return prob_r, prob_d, (logpi, mu, ls), (hN[None], cN[None])


if __name__ == "__main__":
    key = jax.random.PRNGKey(0)
    kx, kp = jax.random.split(key)
    B, T = 2, 8
    x = jax.random.normal(kx, (B, T, INPUT), dtype=jnp.float32)
    h = jnp.zeros((2, N_LAYERS, B, HIDDEN), dtype=jnp.float32)   # init_hidden(B)
    params = make_params(kp)

    out = mdnrnn_forward(x, h, params)
    out = jax.tree_util.tree_map(jax.block_until_ready, out)

    ref = reference_forward(x, h, params)
    for a, r in zip(jax.tree_util.tree_leaves(out), jax.tree_util.tree_leaves(ref)):
        np.testing.assert_allclose(np.asarray(a), np.asarray(r), rtol=1e-4, atol=1e-4)

    print("KERNEL_OK")
</pallas_src>

<mosaic_0001>
module attributes {stable_mosaic.version = 11 : i64} {
  func.func @mdnrnn_kernel(%arg0: memref<16x32xf32, #tpu.memory_space<vmem>>, %arg1: memref<2x32xf32, #tpu.memory_space<vmem>>, %arg2: memref<2x32xf32, #tpu.memory_space<vmem>>, %arg3: memref<32x128xf32, #tpu.memory_space<vmem>>, %arg4: memref<32x128xf32, #tpu.memory_space<vmem>>, %arg5: memref<1x128xf32, #tpu.memory_space<vmem>>, %arg6: memref<32x64xf32, #tpu.memory_space<vmem>>, %arg7: memref<1x64xf32, #tpu.memory_space<vmem>>, %arg8: memref<16x128xf32, #tpu.memory_space<vmem>>, %arg9: memref<16x128xf32, #tpu.memory_space<vmem>>) attributes {dimension_semantics = [], scalar_prefetch = 0 : i64, scratch_operands = 1 : i64, tpu.core_type = #tpu.core_type<tc>} {
    %c0 = arith.constant 0 : index
    %c0_0 = arith.constant 0 : index
    %0 = vector.load %arg0[%c0, %c0_0] : memref<16x32xf32, #tpu.memory_space<vmem>>, vector<16x32xf32>
    %c0_1 = arith.constant 0 : index
    %c0_2 = arith.constant 0 : index
    %1 = vector.load %arg3[%c0_1, %c0_2] : memref<32x128xf32, #tpu.memory_space<vmem>>, vector<32x128xf32>
    %cst = arith.constant dense<0.000000e+00> : vector<16x128xf32>
    %2 = tpu.matmul %0, %1, %cst {dimension_numbers = #tpu.dot_dimension_numbers<[1], [0], [0], [1], [0, 0, 1, 1], [], []>} : vector<16x32xf32>, vector<32x128xf32>, vector<16x128xf32> -> vector<16x128xf32>
    %c0_3 = arith.constant 0 : index
    %c0_4 = arith.constant 0 : index
    %3 = vector.load %arg5[%c0_3, %c0_4] : memref<1x128xf32, #tpu.memory_space<vmem>>, vector<1x128xf32>
    %4 = vector.broadcast %3 : vector<1x128xf32> to vector<16x128xf32>
    %5 = arith.addf %2, %4 : vector<16x128xf32>
    %c0_5 = arith.constant 0 : index
    %c0_6 = arith.constant 0 : index
    %6 = vector.load %arg9[%c0_5, %c0_6] : memref<16x128xf32, #tpu.memory_space<vmem>>, vector<16x128xf32>
    tpu.vector_store %arg9[%c0_5, %c0_6], %5 {strides = array<i32>} : memref<16x128xf32, #tpu.memory_space<vmem>>, vector<16x128xf32>,
    %c0_7 = arith.constant 0 : index
    %c0_8 = arith.constant 0 : index
    %7 = vector.load %arg4[%c0_7, %c0_8] : memref<32x128xf32, #tpu.memory_space<vmem>>, vector<32x128xf32>
    %c0_9 = arith.constant 0 : index
    %c0_10 = arith.constant 0 : index
    %8 = vector.load %arg1[%c0_9, %c0_10] : memref<2x32xf32, #tpu.memory_space<vmem>>, vector<2x32xf32>
    %c0_11 = arith.constant 0 : index
    %c0_12 = arith.constant 0 : index
    %9 = vector.load %arg2[%c0_11, %c0_12] : memref<2x32xf32, #tpu.memory_space<vmem>>, vector<2x32xf32>
    %c0_13 = arith.constant 0 : index
    %c0_14 = arith.constant 0 : index
    %10 = vector.load %arg9[%c0_13, %c0_14] : memref<16x128xf32, #tpu.memory_space<vmem>>, vector<2x128xf32>
    %cst_15 = arith.constant dense<0.000000e+00> : vector<2x128xf32>
    %11 = tpu.matmul %8, %7, %cst_15 {dimension_numbers = #tpu.dot_dimension_numbers<[1], [0], [0], [1], [0, 0, 1, 1], [], []>} : vector<2x32xf32>, vector<32x128xf32>, vector<2x128xf32> -> vector<2x128xf32>
    %12 = arith.addf %10, %11 : vector<2x128xf32>
    %13 = arith.negf %12 : vector<2x128xf32>
    %14 = math.exp %13 : vector<2x128xf32>
    %cst_16 = arith.constant 1.000000e+00 : f32
    %15 = vector.broadcast %cst_16 : f32 to vector<2x128xf32>
    %16 = arith.addf %15, %14 : vector<2x128xf32>
    %17 = arith.divf %15, %16 : vector<2x128xf32>
    %18 = math.tanh %12 : vector<2x128xf32>
    %19 = vector.extract_strided_slice %17 {offsets = [0, 32], sizes = [2, 32], strides = [1, 1]} : vector<2x128xf32> to vector<2x32xf32>
    %20 = arith.mulf %19, %9 : vector<2x32xf32>
    %21 = vector.extract_strided_slice %17 {offsets = [0, 0], sizes = [2, 32], strides = [1, 1]} : vector<2x128xf32> to vector<2x32xf32>
    %22 = vector.extract_strided_slice %18 {offsets = [0, 64], sizes = [2, 32], strides = [1, 1]} : vector<2x128xf32> to vector<2x32xf32>
    %23 = arith.mulf %21, %22 : vector<2x32xf32>
    %24 = arith.addf %20, %23 : vector<2x32xf32>
    %25 = vector.extract_strided_slice %17 {offsets = [0, 96], sizes = [2, 32], strides = [1, 1]} : vector<2x128xf32> to vector<2x32xf32>
    %26 = math.tanh %24 : vector<2x32xf32>
    %27 = arith.mulf %25, %26 : vector<2x32xf32>
    %c2 = arith.constant 2 : index
    %c0_17 = arith.constant 0 : index
    %28 = vector.load %arg9[%c2, %c0_17] : memref<16x128xf32, #tpu.memory_space<vmem>>, vector<2x128xf32>
    %cst_18 = arith.constant dense<0.000000e+00> : vector<2x128xf32>
    %29 = tpu.matmul %27, %7, %cst_18 {dimension_numbers = #tpu.dot_dimension_numbers<[1], [0], [0], [1], [0, 0, 1, 1], [], []>} : vector<2x32xf32>, vector<32x128xf32>, vector<2x128xf32> -> vector<2x128xf32>
    %30 = arith.addf %28, %29 : vector<2x128xf32>
    %31 = arith.negf %30 : vector<2x128xf32>
    %32 = math.exp %31 : vector<2x128xf32>
    %cst_19 = arith.constant 1.000000e+00 : f32
    %33 = vector.broadcast %cst_19 : f32 to vector<2x128xf32>
    %34 = arith.addf %33, %32 : vector<2x128xf32>
    %35 = arith.divf %33, %34 : vector<2x128xf32>
    %36 = math.tanh %30 : vector<2x128xf32>
    %37 = vector.extract_strided_slice %35 {offsets = [0, 32], sizes = [2, 32], strides = [1, 1]} : vector<2x128xf32> to vector<2x32xf32>
    %38 = arith.mulf %37, %24 : vector<2x32xf32>
    %39 = vector.extract_strided_slice %35 {offsets = [0, 0], sizes = [2, 32], strides = [1, 1]} : vector<2x128xf32> to vector<2x32xf32>
    %40 = vector.extract_strided_slice %36 {offsets = [0, 64], sizes = [2, 32], strides = [1, 1]} : vector<2x128xf32> to vector<2x32xf32>
    %41 = arith.mulf %39, %40 : vector<2x32xf32>
    %42 = arith.addf %38, %41 : vector<2x32xf32>
    %43 = vector.extract_strided_slice %35 {offsets = [0, 96], sizes = [2, 32], strides = [1, 1]} : vector<2x128xf32> to vector<2x32xf32>
    %44 = math.tanh %42 : vector<2x32xf32>
    %45 = arith.mulf %43, %44 : vector<2x32xf32>
    %c4 = arith.constant 4 : index
    %c0_20 = arith.constant 0 : index
    %46 = vector.load %arg9[%c4, %c0_20] : memref<16x128xf32, #tpu.memory_space<vmem>>, vector<2x128xf32>
    %cst_21 = arith.constant dense<0.000000e+00> : vector<2x128xf32>
    %47 = tpu.matmul %45, %7, %cst_21 {dimension_numbers = #tpu.dot_dimension_numbers<[1], [0], [0], [1], [0, 0, 1, 1], [], []>} : vector<2x32xf32>, vector<32x128xf32>, vector<2x128xf32> -> vector<2x128xf32>
    %48 = arith.addf %46, %47 : vector<2x128xf32>
    %49 = arith.negf %48 : vector<2x128xf32>
    %50 = math.exp %49 : vector<2x128xf32>
    %cst_22 = arith.constant 1.000000e+00 : f32
    %51 = vector.broadcast %cst_22 : f32 to vector<2x128xf32>
    %52 = arith.addf %51, %50 : vector<2x128xf32>
    %53 = arith.divf %51, %52 : vector<2x128xf32>
    %54 = math.tanh %48 : vector<2x128xf32>
    %55 = vector.extract_strided_slice %53 {offsets = [0, 32], sizes = [2, 32], strides = [1, 1]} : vector<2x128xf32> to vector<2x32xf32>
    %56 = arith.mulf %55, %42 : vector<2x32xf32>
    %57 = vector.extract_strided_slice %53 {offsets = [0, 0], sizes = [2, 32], strides = [1, 1]} : vector<2x128xf32> to vector<2x32xf32>
    %58 = vector.extract_strided_slice %54 {offsets = [0, 64], sizes = [2, 32], strides = [1, 1]} : vector<2x128xf32> to vector<2x32xf32>
    %59 = arith.mulf %57, %58 : vector<2x32xf32>
    %60 = arith.addf %56, %59 : vector<2x32xf32>
    %61 = vector.extract_strided_slice %53 {offsets = [0, 96], sizes = [2, 32], strides = [1, 1]} : vector<2x128xf32> to vector<2x32xf32>
    %62 = math.tanh %60 : vector<2x32xf32>
    %63 = arith.mulf %61, %62 : vector<2x32xf32>
    %c6 = arith.constant 6 : index
    %c0_23 = arith.constant 0 : index
    %64 = vector.load %arg9[%c6, %c0_23] : memref<16x128xf32, #tpu.memory_space<vmem>>, vector<2x128xf32>
    %cst_24 = arith.constant dense<0.000000e+00> : vector<2x128xf32>
    %65 = tpu.matmul %63, %7, %cst_24 {dimension_numbers = #tpu.dot_dimension_numbers<[1], [0], [0], [1], [0, 0, 1, 1], [], []>} : vector<2x32xf32>, vector<32x128xf32>, vector<2x128xf32> -> vector<2x128xf32>
    %66 = arith.addf %64, %65 : vector<2x128xf32>
    %67 = arith.negf %66 : vector<2x128xf32>
    %68 = math.exp %67 : vector<2x128xf32>
    %cst_25 = arith.constant 1.000000e+00 : f32
    %69 = vector.broadcast %cst_25 : f32 to vector<2x128xf32>
    %70 = arith.addf %69, %68 : vector<2x128xf32>
    %71 = arith.divf %69, %70 : vector<2x128xf32>
    %72 = math.tanh %66 : vector<2x128xf32>
    %73 = vector.extract_strided_slice %71 {offsets = [0, 32], sizes = [2, 32], strides = [1, 1]} : vector<2x128xf32> to vector<2x32xf32>
    %74 = arith.mulf %73, %60 : vector<2x32xf32>
    %75 = vector.extract_strided_slice %71 {offsets = [0, 0], sizes = [2, 32], strides = [1, 1]} : vector<2x128xf32> to vector<2x32xf32>
    %76 = vector.extract_strided_slice %72 {offsets = [0, 64], sizes = [2, 32], strides = [1, 1]} : vector<2x128xf32> to vector<2x32xf32>
    %77 = arith.mulf %75, %76 : vector<2x32xf32>
    %78 = arith.addf %74, %77 : vector<2x32xf32>
    %79 = vector.extract_strided_slice %71 {offsets = [0, 96], sizes = [2, 32], strides = [1, 1]} : vector<2x128xf32> to vector<2x32xf32>
    %80 = math.tanh %78 : vector<2x32xf32>
    %81 = arith.mulf %79, %80 : vector<2x32xf32>
    %c8 = arith.constant 8 : index
    %c0_26 = arith.constant 0 : index
    %82 = vector.load %arg9[%c8, %c0_26] : memref<16x128xf32, #tpu.memory_space<vmem>>, vector<2x128xf32>
    %cst_27 = arith.constant dense<0.000000e+00> : vector<2x128xf32>
    %83 = tpu.matmul %81, %7, %cst_27 {dimension_numbers = #tpu.dot_dimension_numbers<[1], [0], [0], [1], [0, 0, 1, 1], [], []>} : vector<2x32xf32>, vector<32x128xf32>, vector<2x128xf32> -> vector<2x128xf32>
    %84 = arith.addf %82, %83 : vector<2x128xf32>
    %85 = arith.negf %84 : vector<2x128xf32>
    %86 = math.exp %85 : vector<2x128xf32>
    %cst_28 = arith.constant 1.000000e+00 : f32
    %87 = vector.broadcast %cst_28 : f32 to vector<2x128xf32>
    %88 = arith.addf %87, %86 : vector<2x128xf32>
    %89 = arith.divf %87, %88 : vector<2x128xf32>
    %90 = math.tanh %84 : vector<2x128xf32>
    %91 = vector.extract_strided_slice %89 {offsets = [0, 32], sizes = [2, 32], strides = [1, 1]} : vector<2x128xf32> to vector<2x32xf32>
    %92 = arith.mulf %91, %78 : vector<2x32xf32>
    %93 = vector.extract_strided_slice %89 {offsets = [0, 0], sizes = [2, 32], strides = [1, 1]} : vector<2x128xf32> to vector<2x32xf32>
    %94 = vector.extract_strided_slice %90 {offsets = [0, 64], sizes = [2, 32], strides = [1, 1]} : vector<2x128xf32> to vector<2x32xf32>
    %95 = arith.mulf %93, %94 : vector<2x32xf32>
    %96 = arith.addf %92, %95 : vector<2x32xf32>
    %97 = vector.extract_strided_slice %89 {offsets = [0, 96], sizes = [2, 32], strides = [1, 1]} : vector<2x128xf32> to vector<2x32xf32>
    %98 = math.tanh %96 : vector<2x32xf32>
    %99 = arith.mulf %97, %98 : vector<2x32xf32>
    %c10 = arith.constant 10 : index
    %c0_29 = arith.constant 0 : index
    %100 = vector.load %arg9[%c10, %c0_29] : memref<16x128xf32, #tpu.memory_space<vmem>>, vector<2x128xf32>
    %cst_30 = arith.constant dense<0.000000e+00> : vector<2x128xf32>
    %101 = tpu.matmul %99, %7, %cst_30 {dimension_numbers = #tpu.dot_dimension_numbers<[1], [0], [0], [1], [0, 0, 1, 1], [], []>} : vector<2x32xf32>, vector<32x128xf32>, vector<2x128xf32> -> vector<2x128xf32>
    %102 = arith.addf %100, %101 : vector<2x128xf32>
    %103 = arith.negf %102 : vector<2x128xf32>
    %104 = math.exp %103 : vector<2x128xf32>
    %cst_31 = arith.constant 1.000000e+00 : f32
    %105 = vector.broadcast %cst_31 : f32 to vector<2x128xf32>
    %106 = arith.addf %105, %104 : vector<2x128xf32>
    %107 = arith.divf %105, %106 : vector<2x128xf32>
    %108 = math.tanh %102 : vector<2x128xf32>
    %109 = vector.extract_strided_slice %107 {offsets = [0, 32], sizes = [2, 32], strides = [1, 1]} : vector<2x128xf32> to vector<2x32xf32>
    %110 = arith.mulf %109, %96 : vector<2x32xf32>
    %111 = vector.extract_strided_slice %107 {offsets = [0, 0], sizes = [2, 32], strides = [1, 1]} : vector<2x128xf32> to vector<2x32xf32>
    %112 = vector.extract_strided_slice %108 {offsets = [0, 64], sizes = [2, 32], strides = [1, 1]} : vector<2x128xf32> to vector<2x32xf32>
    %113 = arith.mulf %111, %112 : vector<2x32xf32>
    %114 = arith.addf %110, %113 : vector<2x32xf32>
    %115 = vector.extract_strided_slice %107 {offsets = [0, 96], sizes = [2, 32], strides = [1, 1]} : vector<2x128xf32> to vector<2x32xf32>
    %116 = math.tanh %114 : vector<2x32xf32>
    %117 = arith.mulf %115, %116 : vector<2x32xf32>
    %c12 = arith.constant 12 : index
    %c0_32 = arith.constant 0 : index
    %118 = vector.load %arg9[%c12, %c0_32] : memref<16x128xf32, #tpu.memory_space<vmem>>, vector<2x128xf32>
    %cst_33 = arith.constant dense<0.000000e+00> : vector<2x128xf32>
    %119 = tpu.matmul %117, %7, %cst_33 {dimension_numbers = #tpu.dot_dimension_numbers<[1], [0], [0], [1], [0, 0, 1, 1], [], []>} : vector<2x32xf32>, vector<32x128xf32>, vector<2x128xf32> -> vector<2x128xf32>
    %120 = arith.addf %118, %119 : vector<2x128xf32>
    %121 = arith.negf %120 : vector<2x128xf32>
    %122 = math.exp %121 : vector<2x128xf32>
    %cst_34 = arith.constant 1.000000e+00 : f32
    %123 = vector.broadcast %cst_34 : f32 to vector<2x128xf32>
    %124 = arith.addf %123, %122 : vector<2x128xf32>
    %125 = arith.divf %123, %124 : vector<2x128xf32>
    %126 = math.tanh %120 : vector<2x128xf32>
    %127 = vector.extract_strided_slice %125 {offsets = [0, 32], sizes = [2, 32], strides = [1, 1]} : vector<2x128xf32> to vector<2x32xf32>
    %128 = arith.mulf %127, %114 : vector<2x32xf32>
    %129 = vector.extract_strided_slice %125 {offsets = [0, 0], sizes = [2, 32], strides = [1, 1]} : vector<2x128xf32> to vector<2x32xf32>
    %130 = vector.extract_strided_slice %126 {offsets = [0, 64], sizes = [2, 32], strides = [1, 1]} : vector<2x128xf32> to vector<2x32xf32>
    %131 = arith.mulf %129, %130 : vector<2x32xf32>
    %132 = arith.addf %128, %131 : vector<2x32xf32>
    %133 = vector.extract_strided_slice %125 {offsets = [0, 96], sizes = [2, 32], strides = [1, 1]} : vector<2x128xf32> to vector<2x32xf32>
    %134 = math.tanh %132 : vector<2x32xf32>
    %135 = arith.mulf %133, %134 : vector<2x32xf32>
    %c14 = arith.constant 14 : index
    %c0_35 = arith.constant 0 : index
    %136 = vector.load %arg9[%c14, %c0_35] : memref<16x128xf32, #tpu.memory_space<vmem>>, vector<2x128xf32>
    %cst_36 = arith.constant dense<0.000000e+00> : vector<2x128xf32>
    %137 = tpu.matmul %135, %7, %cst_36 {dimension_numbers = #tpu.dot_dimension_numbers<[1], [0], [0], [1], [0, 0, 1, 1], [], []>} : vector<2x32xf32>, vector<32x128xf32>, vector<2x128xf32> -> vector<2x128xf32>
    %138 = arith.addf %136, %137 : vector<2x128xf32>
    %139 = arith.negf %138 : vector<2x128xf32>
    %140 = math.exp %139 : vector<2x128xf32>
    %cst_37 = arith.constant 1.000000e+00 : f32
    %141 = vector.broadcast %cst_37 : f32 to vector<2x128xf32>
    %142 = arith.addf %141, %140 : vector<2x128xf32>
    %143 = arith.divf %141, %142 : vector<2x128xf32>
    %144 = math.tanh %138 : vector<2x128xf32>
    %145 = vector.extract_strided_slice %143 {offsets = [0, 32], sizes = [2, 32], strides = [1, 1]} : vector<2x128xf32> to vector<2x32xf32>
    %146 = arith.mulf %145, %132 : vector<2x32xf32>
    %147 = vector.extract_strided_slice %143 {offsets = [0, 0], sizes = [2, 32], strides = [1, 1]} : vector<2x128xf32> to vector<2x32xf32>
    %148 = vector.extract_strided_slice %144 {offsets = [0, 64], sizes = [2, 32], strides = [1, 1]} : vector<2x128xf32> to vector<2x32xf32>
    %149 = arith.mulf %147, %148 : vector<2x32xf32>
    %150 = arith.addf %146, %149 : vector<2x32xf32>
    %151 = vector.extract_strided_slice %143 {offsets = [0, 96], sizes = [2, 32], strides = [1, 1]} : vector<2x128xf32> to vector<2x32xf32>
    %152 = math.tanh %150 : vector<2x32xf32>
    %153 = arith.mulf %151, %152 : vector<2x32xf32>
    %154 = tpu.concatenate %27, %45, %63, %81, %99, %117, %135, %153 in 0 : vector<2x32xf32>, vector<2x32xf32>, vector<2x32xf32>, vector<2x32xf32>, vector<2x32xf32>, vector<2x32xf32>, vector<2x32xf32>, vector<2x32xf32> -> vector<16x32xf32>
    %c0_38 = arith.constant 0 : index
    %c0_39 = arith.constant 0 : index
    %155 = vector.load %arg6[%c0_38, %c0_39] : memref<32x64xf32, #tpu.memory_space<vmem>>, vector<32x64xf32>
    %cst_40 = arith.constant dense<0.000000e+00> : vector<16x64xf32>
    %156 = tpu.matmul %154, %155, %cst_40 {dimension_numbers = #tpu.dot_dimension_numbers<[1], [0], [0], [1], [0, 0, 1, 1], [], []>} : vector<16x32xf32>, vector<32x64xf32>, vector<16x64xf32> -> vector<16x64xf32>
    %c0_41 = arith.constant 0 : index
    %c0_42 = arith.constant 0 : index
    %157 = vector.load %arg7[%c0_41, %c0_42] : memref<1x64xf32, #tpu.memory_space<vmem>>, vector<1x64xf32>
    %158 = vector.broadcast %157 : vector<1x64xf32> to vector<16x64xf32>
    %159 = arith.addf %156, %158 : vector<16x64xf32>
    %160 = vector.extract_strided_slice %159 {offsets = [0, 0], sizes = [16, 20], strides = [1, 1]} : vector<16x64xf32> to vector<16x20xf32>
    %161 = vector.extract_strided_slice %160 {offsets = [0, 0], sizes = [16, 4], strides = [1, 1]} : vector<16x20xf32> to vector<16x4xf32>
    %162 = vector.extract_strided_slice %160 {offsets = [0, 4], sizes = [16, 4], strides = [1, 1]} : vector<16x20xf32> to vector<16x4xf32>
    %163 = arith.maximumf %161, %162 : vector<16x4xf32>
    %164 = vector.extract_strided_slice %160 {offsets = [0, 8], sizes = [16, 4], strides = [1, 1]} : vector<16x20xf32> to vector<16x4xf32>
    %165 = arith.maximumf %163, %164 : vector<16x4xf32>
    %166 = vector.extract_strided_slice %160 {offsets = [0, 12], sizes = [16, 4], strides = [1, 1]} : vector<16x20xf32> to vector<16x4xf32>
    %167 = arith.maximumf %165, %166 : vector<16x4xf32>
    %168 = vector.extract_strided_slice %160 {offsets = [0, 16], sizes = [16, 4], strides = [1, 1]} : vector<16x20xf32> to vector<16x4xf32>
    %169 = arith.maximumf %167, %168 : vector<16x4xf32>
    %170 = tpu.concatenate %169, %169, %169, %169, %169 in 1 : vector<16x4xf32>, vector<16x4xf32>, vector<16x4xf32>, vector<16x4xf32>, vector<16x4xf32> -> vector<16x20xf32>
    %171 = arith.subf %160, %170 : vector<16x20xf32>
    %172 = math.exp %171 : vector<16x20xf32>
    %173 = vector.extract_strided_slice %172 {offsets = [0, 0], sizes = [16, 4], strides = [1, 1]} : vector<16x20xf32> to vector<16x4xf32>
    %174 = vector.extract_strided_slice %172 {offsets = [0, 4], sizes = [16, 4], strides = [1, 1]} : vector<16x20xf32> to vector<16x4xf32>
    %175 = arith.addf %173, %174 : vector<16x4xf32>
    %176 = vector.extract_strided_slice %172 {offsets = [0, 8], sizes = [16, 4], strides = [1, 1]} : vector<16x20xf32> to vector<16x4xf32>
    %177 = arith.addf %175, %176 : vector<16x4xf32>
    %178 = vector.extract_strided_slice %172 {offsets = [0, 12], sizes = [16, 4], strides = [1, 1]} : vector<16x20xf32> to vector<16x4xf32>
    %179 = arith.addf %177, %178 : vector<16x4xf32>
    %180 = vector.extract_strided_slice %172 {offsets = [0, 16], sizes = [16, 4], strides = [1, 1]} : vector<16x20xf32> to vector<16x4xf32>
    %181 = arith.addf %179, %180 : vector<16x4xf32>
    %182 = math.log %181 : vector<16x4xf32>
    %183 = arith.addf %169, %182 : vector<16x4xf32>
    %184 = tpu.concatenate %183, %183, %183, %183, %183 in 1 : vector<16x4xf32>, vector<16x4xf32>, vector<16x4xf32>, vector<16x4xf32>, vector<16x4xf32> -> vector<16x20xf32>
    %185 = arith.subf %160, %184 : vector<16x20xf32>
    %186 = vector.extract_strided_slice %159 {offsets = [0, 60], sizes = [16, 3], strides = [1, 1]} : vector<16x64xf32> to vector<16x3xf32>
    %cst_43 = arith.constant dense<0xFF800000> : vector<16xf32>
    %187 = vector.multi_reduction <maximumf>, %186, %cst_43 [1] : vector<16x3xf32> to vector<16xf32>
    %188 = vector.shape_cast %187 : vector<16xf32> to vector<16x1xf32>
    %189 = vector.broadcast %188 : vector<16x1xf32> to vector<16x3xf32>
    %190 = arith.subf %186, %189 : vector<16x3xf32>
    %191 = math.exp %190 : vector<16x3xf32>
    %cst_44 = arith.constant dense<0.000000e+00> : vector<16xf32>
    %192 = vector.multi_reduction <add>, %191, %cst_44 [1] : vector<16x3xf32> to vector<16xf32>
    %193 = vector.shape_cast %192 : vector<16xf32> to vector<16x1xf32>
    %194 = vector.broadcast %193 : vector<16x1xf32> to vector<16x3xf32>
    %195 = arith.divf %191, %194 : vector<16x3xf32>
    %196 = vector.extract_strided_slice %159 {offsets = [0, 63], sizes = [16, 1], strides = [1, 1]} : vector<16x64xf32> to vector<16x1xf32>
    %197 = arith.negf %196 : vector<16x1xf32>
    %198 = math.exp %197 : vector<16x1xf32>
    %cst_45 = arith.constant 1.000000e+00 : f32
    %199 = vector.broadcast %cst_45 : f32 to vector<16x1xf32>
    %200 = arith.addf %199, %198 : vector<16x1xf32>
    %201 = arith.divf %199, %200 : vector<16x1xf32>
    %202 = tpu.concatenate %153, %150 in 1 : vector<2x32xf32>, vector<2x32xf32> -> vector<2x64xf32>
    %cst_46 = arith.constant 0.000000e+00 : f32
    %203 = vector.broadcast %cst_46 : f32 to vector<14x64xf32>
    %204 = tpu.concatenate %202, %203 in 0 : vector<2x64xf32>, vector<14x64xf32> -> vector<16x64xf32>
    %205 = vector.extract_strided_slice %159 {offsets = [0, 20], sizes = [16, 40], strides = [1, 1]} : vector<16x64xf32> to vector<16x40xf32>
    %206 = tpu.concatenate %185, %205, %195, %201, %204 in 1 : vector<16x20xf32>, vector<16x40xf32>, vector<16x3xf32>, vector<16x1xf32>, vector<16x64xf32> -> vector<16x128xf32>
    %c0_47 = arith.constant 0 : index
    %c0_48 = arith.constant 0 : index
    %207 = vector.load %arg8[%c0_47, %c0_48] : memref<16x128xf32, #tpu.memory_space<vmem>>, vector<16x128xf32>
    tpu.vector_store %arg8[%c0_47, %c0_48], %206 {strides = array<i32>} : memref<16x128xf32, #tpu.memory_space<vmem>>, vector<16x128xf32>,
    return
  }
}

</mosaic_0001>

<bundles_post_ra>
// kernel: mdnrnn_forward.1
= control target key start
LH: loop header
LB: loop body
LE: loop exit
PB: predicated region body
PF: predicated region fallthrough
CT: control target
= control target key end

     0   :  { %vm42_vm0 = vcmask 261120   ;;  %v1641_v3 = vmov 0.0|0.0   ;;  %vm1642_vm1 = vmmov 0   ;;  %v1643_v4 = vmov 0.0   ;;  %s1646_s14 = smov 124   ;;  %s1647_s15 = smov 120   ;;  %s1987_s3 = inlined_call_operand.vmem [shape: f32[32,128], index: 3, kind: input, shape index: {}]   ;;  %s1988_s0 = inlined_call_operand.vmem [shape: f32[16,32], index: 0, kind: input, shape index: {}]   ;;  %s1989_s4 = inlined_call_operand.vmem [shape: f32[32,128], index: 4, kind: input, shape index: {}]   ;;  %s1990_s1 = inlined_call_operand.vmem [shape: f32[2,32], index: 1, kind: input, shape index: {}]   ;;  %s1991_s5 = inlined_call_operand.vmem [shape: f32[1,128], index: 5, kind: input, shape index: {}]   ;;  %s1992_s2 = inlined_call_operand.vmem [shape: f32[2,32], index: 2, kind: input, shape index: {}]   ;;  %s1993_s6 = inlined_call_operand.vmem [shape: f32[32,64], index: 6, kind: input, shape index: {}]   ;;  %s1994_s7 = inlined_call_operand.vmem [shape: f32[1,64], index: 7, kind: input, shape index: {}]   ;;  %s1995_s8 = inlined_call_operand.vmem [shape: f32[16,128], index: 8, kind: output, shape index: {}]  }
   0x1   :  { %v31_v0 = vld [vmem:[%s1987_s3] sm:$0xff]  ;;  %v32_v1 = vld [vmem:[%s1987_s3 + $0x8] sm:$0xff]  ;;  %v33_v2 = vld [vmem:[%s1987_s3 + $0x10] sm:$0xff]  ;;  %1483 = vmatprep.subr.bf16.mxu1 %v1641_v3  ;;  %1384 = vmatprep.mubr.msk.f32.mxu1 %vm1642_vm1, %v1643_v4  ;;  %vm955_vm2 = vcmask 1041408   ;;  %vm957_vm3 = vcmask 1043456   ;;  %vm959_vm4 = vcmask 1045504  }
   0x2   :  { %v1475_v5 = vpack.c.bf16 %v32_v1, %v31_v0  ;;  %v34_v6 = vld [vmem:[%s1987_s3 + $0x18] sm:$0xff]  ;;  %v29_v7 = vld [vmem:[%s1988_s0] sm:$0xff]  ;;  %v127_v10 = vld [vmem:[%s1989_s4 + $0x8] sm:$0xff]  ;;  %s1649_s16 = smov 112   ;;  %vm1214_vm5 = vcmask 515552   ;;  %s1650_s17 = smov 4  }
   0x3   :  { %v1479_v8 = vpack.c.bf16 %v34_v6, %v33_v2  ;;  %1373 = vmatprep.mubr.msk.f32.mxu0 %vm42_vm0, %v29_v7  ;;  %v126_v9 = vld [vmem:[%s1989_s4] sm:$0xff]  ;;  %v128_v11 = vld [vmem:[%s1989_s4 + $0x10] sm:$0xff]  ;;  %v129_v13 = vld [vmem:[%s1989_s4 + $0x18] sm:$0xff]  ;;  %s1644_s4 = smov 64   ;;  %s1651_s18 = smov 8   ;;  %vm1120_vm6 = vcmask 31744  }
   0x4   :  { %1476 = vmatprep.subr.bf16.mxu0 %v1475_v5  ;;  %v1728_v12 = vpack.c.bf16 %v127_v10, %v126_v9  ;;  %v1734_v14 = vpack.c.bf16 %v129_v13, %v128_v11  ;;  %v30_v15 = vld [vmem:[%s1988_s0 + $0x8] sm:$0xff]  ;;  %v130_v16 = vld [vmem:[%s1990_s1] sm:$0x3]  ;;  %s1652_s19 = smov 12   ;;  %s1653_s20 = smov 16   ;;  %vm1123_vm7 = vcmask 64512  }
   0x5   :  { %1478 = vmatpush3.bf16.msra.mxu0 %v1475_v5  ;;  %v1289_v17 = vld [vmem:[%s1991_s5] ss:$0 sm:$0xff]  ;;  %s1645_s5 = smov 32   ;;  %s1654_s3 = smov 68   ;;  %vm1126_vm8 = vcmask 97280   ;;  %vm1129_vm9 = vcmask 130048  }
   0x6   :  { %1480 = vmatprep.subr.bf16.mxu0 %v1479_v8  ;;  %1485 = vmatpush3.bf16.msra.mxu1 %v1728_v12  ;;  %v131_v27 = vld [vmem:[%s1992_s2] sm:$0x3]  ;;  %vm1235_vm10 = vcmask 23552   ;;  %vm1271_vm11 = vcmask 162816   ;;  %vm1274_vm12 = vcmask 490496   ;;  %vm1277_vm13 = vcmask 515072  }
   0x7   :  { %1486 = vmatprep.subr.bf16.mxu1 %v1641_v3  ;;  %vm1280_vm14 = vcmask 523264  }
   0x9   :  { %1482 = vmatpush3.bf16.msra.mxu0 %v1479_v8 }
   0xa   :  { %1488 = vmatpush3.bf16.msra.mxu1 %v1734_v14  ;;  %1489 = vmatprep.subr.bf16.mxu0 %v1641_v3 }
   0xb   :  { %1495 = vmatprep.subr.bf16.mxu1 %v1641_v3 }
   0xc   :  { %1374 = vmatmul.mubr.msk.f32.vlgmr.msra.gmra.mrb[0].mxu0 %vm42_vm0, %v30_v15 }
   0xd   :  { %1385 = vmatmul.mubr.msk.f32.vlgmr.msra.gmra.mrb[0].mxu1 %vm42_vm0, %v130_v16  ;;  %1491 = vmatpush3.bf16.msra.mxu0 %v1728_v12 }
   0xe   :  { %1492 = vmatprep.subr.bf16.mxu0 %v1641_v3  ;;  %1395 = vmatprep.mubr.msk.f32.mxu0 %vm1642_vm1, %v1643_v4 }
   0xf   :  { %1497 = vmatpush3.bf16.msra.mxu1 %v1728_v12  ;;  %1406 = vmatprep.mubr.msk.f32.mxu1 %vm1642_vm1, %v1643_v4 }
  0x10   :  { %1498 = vmatprep.subr.bf16.mxu1 %v1641_v3 }
  0x11   :  { %1494 = vmatpush3.bf16.msra.mxu0 %v1734_v14 }
  0x12   :  { %1501 = vmatprep.subr.bf16.mxu0 %v1641_v3 }
  0x13   :  { %1500 = vmatpush3.bf16.msra.mxu1 %v1734_v14 }
  0x14   :  { %1507 = vmatprep.subr.bf16.mxu1 %v1641_v3 }
  0xdf   :  { %v1375_v18 = vpop.f32.mrb[0].mxu0 }
  0xe0   :  { %v121_v19 = vadd.f32 %v1375_v18, %v1289_v17  ;;  %v115_v20 = vpop.f32.mrb[1].mxu0  ;;  %v202_v21 = vpop.f32.mrb[0].mxu1 }
  0xe1   :  { %v116_v22 = vadd.f32 %v1289_v17, %v115_v20  ;;  %v1386_v23 = vpop.f32.mrb[1].mxu1 }
  0xe2   :  { %125 = vst [vmem:[#allocation2 + $0x8] sm:$0xff] %v121_v19 }
  0xe3   :  { %124 = vst [vmem:[#allocation2] sm:$0xff] %v116_v22 }
  0xea   :  { %v132_v24 = vld [vmem:[#allocation2] sm:$0x3]  ;;  %v235_v42 = vld [vmem:[#allocation2 + $0x2] sm:$0x3]  ;;  %v336_v60 = vld [vmem:[#allocation2 + $0x4] sm:$0x3] }
  0xeb   :  { %v206_v25 = vadd.f32 %v202_v21, %v132_v24  ;;  %v437_v22 = vld [vmem:[#allocation2 + $0x6] sm:$0x3] }
  0xed   :  { %1553 = vtanh.f32 %v206_v25  ;;  %v1293_v28 = vmul.f32 -1.442695, %v206_v25 }
  0xef   :  { %1555 = vpow2.f32 %v1293_v28 }
  0xf7   :  { %v1554_v26 = vpop.eup %1553 }
  0xf8   :  { %220 = vrot.lane.b32.xlu0 %v1554_v26, %s1644_s4 }
  0xf9   :  { %v1556_v29 = vpop.eup %1555 }
  0xfa   :  { %v210_v30 = vadd.f32 1.0, %v1556_v29 }
  0xfc   :  { %215 = vrot.lane.b32.xlu0 %v131_v27, %s1645_s5  ;;  %1557 = vrcp.f32 %v210_v30 }
 0x106   :  { %v1558_v31 = vpop.eup %1557 }
 0x16a   :  { %v221_v32 = vpop.permute.xlu0 %220 }
 0x16b   :  { %v223_v33 = vmul.f32 %v1558_v31, %v221_v32 }
 0x16d   :  { %225 = vrot.lane.b32.xlu1 %v223_v33, %s1645_s5 }
 0x16e   :  { %v216_v34 = vpop.permute.xlu0 %215 }
 0x16f   :  { %v218_v35 = vmul.f32 %v1558_v31, %v216_v34 }
 0x1df   :  { %v226_v36 = vpop.permute.xlu1 %225 }
 0x1e0   :  { %v228_v37 = vadd.f32 %v226_v36, %v218_v35 }
 0x1e2   :  { %1559 = vtanh.f32 %v228_v37 }
 0x1ec   :  { %v1560_v38 = vpop.eup %1559 }
 0x1ed   :  { %231 = vrot.lane.b32.xlu1 %v1560_v38, %s1644_s4 }
 0x25f   :  { %v232_v39 = vpop.permute.xlu1 %231 }
 0x260   :  { %v1770_v40 = vmul.f32 %v1558_v31, %v232_v39 }
 0x262   :  { %237 = vrot.lane.b32.xlu0 %v1770_v40, %s1645_s5 }
 0x2d4   :  { %v238_v41 = vpop.permute.xlu0 %237 }
 0x2d5   :  { %1396 = vmatmul.mubr.msk.f32.vlgmr.msra.gmra.mrb[2].mxu0 %vm42_vm0, %v238_v41 }
 0x2d6   :  { %1503 = vmatpush3.bf16.msra.mxu0 %v1728_v12  ;;  %1417 = vmatprep.mubr.msk.f32.mxu0 %vm1642_vm1, %v1643_v4 }
 0x2d7   :  { %1504 = vmatprep.subr.bf16.mxu0 %v1641_v3 }
 0x2da   :  { %1506 = vmatpush3.bf16.msra.mxu0 %v1734_v14 }
 0x2db   :  { %1513 = vmatprep.subr.bf16.mxu0 %v1641_v3 }
 0x3a8   :  { %v307_v43 = vpop.f32.mrb[2].mxu0 }
 0x3a9   :  { %v311_v44 = vadd.f32 %v307_v43, %v235_v42  ;;  %v1397_v45 = vpop.f32.mrb[3].mxu0  ;;  %v538_v42 = vld [vmem:[#allocation2 + $0x8] sm:$0x3] }
 0x3ab   :  { %1561 = vtanh.f32 %v311_v44  ;;  %v1295_v47 = vmul.f32 -1.442695, %v311_v44 }
 0x3ad   :  { %1563 = vpow2.f32 %v1295_v47 }
 0x3b5   :  { %v1562_v46 = vpop.eup %1561 }
 0x3b6   :  { %321 = vrot.lane.b32.xlu1 %v1562_v46, %s1644_s4 }
 0x3b7   :  { %v1564_v48 = vpop.eup %1563 }
 0x3b8   :  { %v315_v49 = vadd.f32 1.0, %v1564_v48 }
 0x3ba   :  { %1565 = vrcp.f32 %v315_v49 }
 0x3c4   :  { %v1566_v50 = vpop.eup %1565 }
 0x3c5   :  { %v319_v53 = vmul.f32 %v1566_v50, %v228_v37 }
 0x428   :  { %v322_v51 = vpop.permute.xlu1 %321 }
 0x429   :  { %v324_v52 = vmul.f32 %v1566_v50, %v322_v51 }
 0x42b   :  { %326 = vrot.lane.b32.xlu0 %v324_v52, %s1645_s5 }
 0x49d   :  { %v327_v54 = vpop.permute.xlu0 %326 }
 0x49e   :  { %v329_v55 = vadd.f32 %v327_v54, %v319_v53 }
 0x4a0   :  { %1567 = vtanh.f32 %v329_v55 }
 0x4aa   :  { %v1568_v56 = vpop.eup %1567 }
 0x4ab   :  { %332 = vrot.lane.b32.xlu1 %v1568_v56, %s1644_s4 }
 0x51d   :  { %v333_v57 = vpop.permute.xlu1 %332 }
 0x51e   :  { %v335_v58 = vmul.f32 %v1566_v50, %v333_v57 }
 0x520   :  { %338 = vrot.lane.b32.xlu0 %v335_v58, %s1645_s5  ;;  %v942_v15 = vrot.slane %v335_v58, 6 }
 0x522   :  { %v956_v19 = vsel %vm955_vm2, %v1770_v40, %v942_v15  ;;  %v740_v15 = vld [vmem:[#allocation2 + $0xc] sm:$0x3] }
 0x592   :  { %v339_v59 = vpop.permute.xlu0 %338 }
 0x593   :  { %1407 = vmatmul.mubr.msk.f32.vlgmr.msra.gmra.mrb[2].mxu1 %vm42_vm0, %v339_v59 }
 0x594   :  { %1509 = vmatpush3.bf16.msra.mxu1 %v1728_v12  ;;  %1428 = vmatprep.mubr.msk.f32.mxu1 %vm1642_vm1, %v1643_v4 }
 0x595   :  { %1510 = vmatprep.subr.bf16.mxu1 %v1641_v3 }
 0x598   :  { %1512 = vmatpush3.bf16.msra.mxu1 %v1734_v14 }
 0x599   :  { %1519 = vmatprep.subr.bf16.mxu1 %v1641_v3 }
 0x666   :  { %v408_v61 = vpop.f32.mrb[2].mxu1 }
 0x667   :  { %v412_v62 = vadd.f32 %v408_v61, %v336_v60  ;;  %v1408_v63 = vpop.f32.mrb[3].mxu1  ;;  %v639_v60 = vld [vmem:[#allocation2 + $0xa] sm:$0x3] }
 0x669   :  { %1569 = vtanh.f32 %v412_v62  ;;  %v1297_v1 = vmul.f32 -1.442695, %v412_v62 }
 0x66b   :  { %1571 = vpow2.f32 %v1297_v1 }
 0x673   :  { %v1570_v0 = vpop.eup %1569 }
 0x674   :  { %422 = vrot.lane.b32.xlu1 %v1570_v0, %s1644_s4 }
 0x675   :  { %v1572_v2 = vpop.eup %1571 }
 0x676   :  { %v416_v5 = vadd.f32 1.0, %v1572_v2 }
 0x678   :  { %1573 = vrcp.f32 %v416_v5 }
 0x682   :  { %v1574_v6 = vpop.eup %1573 }
 0x683   :  { %v420_v9 = vmul.f32 %v1574_v6, %v329_v55 }
 0x6e6   :  { %v423_v7 = vpop.permute.xlu1 %422 }
 0x6e7   :  { %v425_v8 = vmul.f32 %v1574_v6, %v423_v7 }
 0x6e9   :  { %427 = vrot.lane.b32.xlu0 %v425_v8, %s1645_s5 }
 0x75b   :  { %v428_v10 = vpop.permute.xlu0 %427 }
 0x75c   :  { %v430_v11 = vadd.f32 %v428_v10, %v420_v9 }
 0x75e   :  { %1575 = vtanh.f32 %v430_v11 }
 0x768   :  { %v1576_v13 = vpop.eup %1575 }
 0x769   :  { %433 = vrot.lane.b32.xlu1 %v1576_v13, %s1644_s4 }
 0x7db   :  { %v434_v16 = vpop.permute.xlu1 %433 }
 0x7dc   :  { %v436_v17 = vmul.f32 %v1574_v6, %v434_v16 }
 0x7de   :  { %v944_v18 = vrot.slane %v436_v17, 4  ;;  %439 = vrot.lane.b32.xlu0 %v436_v17, %s1645_s5 }
 0x7e0   :  { %v958_v20 = vsel %vm957_vm3, %v956_v19, %v944_v18 }
 0x850   :  { %v440_v21 = vpop.permute.xlu0 %439 }
 0x851   :  { %1418 = vmatmul.mubr.msk.f32.vlgmr.msra.gmra.mrb[4].mxu0 %vm42_vm0, %v440_v21 }
 0x852   :  { %1515 = vmatpush3.bf16.msra.mxu0 %v1728_v12  ;;  %1439 = vmatprep.mubr.msk.f32.mxu0 %vm1642_vm1, %v1643_v4 }
 0x853   :  { %1516 = vmatprep.subr.bf16.mxu0 %v1641_v3 }
 0x856   :  { %1518 = vmatpush3.bf16.msra.mxu0 %v1734_v14 }
 0x857   :  { %1525 = vmatprep.subr.bf16.mxu0 %v1641_v3 }
 0x924   :  { %v509_v23 = vpop.f32.mrb[4].mxu0 }
 0x925   :  { %v513_v24 = vadd.f32 %v509_v23, %v437_v22  ;;  %v1419_v25 = vpop.f32.mrb[5].mxu0 }
 0x927   :  { %1577 = vtanh.f32 %v513_v24  ;;  %v1299_v27 = vmul.f32 -1.442695, %v513_v24 }
 0x929   :  { %1579 = vpow2.f32 %v1299_v27 }
 0x931   :  { %v1578_v26 = vpop.eup %1577 }
 0x932   :  { %523 = vrot.lane.b32.xlu1 %v1578_v26, %s1644_s4 }
 0x933   :  { %v1580_v28 = vpop.eup %1579 }
 0x934   :  { %v517_v29 = vadd.f32 1.0, %v1580_v28 }
 0x936   :  { %1581 = vrcp.f32 %v517_v29 }
 0x940   :  { %v1582_v30 = vpop.eup %1581 }
 0x941   :  { %v521_v33 = vmul.f32 %v1582_v30, %v430_v11 }
 0x9a4   :  { %v524_v31 = vpop.permute.xlu1 %523 }
 0x9a5   :  { %v526_v32 = vmul.f32 %v1582_v30, %v524_v31 }
 0x9a7   :  { %528 = vrot.lane.b32.xlu0 %v526_v32, %s1645_s5 }
 0xa19   :  { %v529_v34 = vpop.permute.xlu0 %528 }
 0xa1a   :  { %v531_v35 = vadd.f32 %v529_v34, %v521_v33 }
 0xa1c   :  { %1583 = vtanh.f32 %v531_v35 }
 0xa26   :  { %v1584_v36 = vpop.eup %1583 }
 0xa27   :  { %534 = vrot.lane.b32.xlu1 %v1584_v36, %s1644_s4 }
 0xa99   :  { %v535_v37 = vpop.permute.xlu1 %534 }
 0xa9a   :  { %v537_v38 = vmul.f32 %v1582_v30, %v535_v37  ;;  %v841_v37 = vld [vmem:[#allocation2 + $0xe] sm:$0x3] }
 0xa9c   :  { %v946_v39 = vrot.slane %v537_v38, 2  ;;  %540 = vrot.lane.b32.xlu0 %v537_v38, %s1645_s5 }
 0xa9e   :  { %v1811_v40 = vsel %vm959_vm4, %v958_v20, %v946_v39 }
 0xb0e   :  { %v541_v41 = vpop.permute.xlu0 %540 }
 0xb0f   :  { %1429 = vmatmul.mubr.msk.f32.vlgmr.msra.gmra.mrb[4].mxu1 %vm42_vm0, %v541_v41 }
 0xb10   :  { %1521 = vmatpush3.bf16.msra.mxu1 %v1728_v12  ;;  %1450 = vmatprep.mubr.msk.f32.mxu1 %vm1642_vm1, %v1643_v4 }
 0xb11   :  { %1522 = vmatprep.subr.bf16.mxu1 %v1641_v3 }
 0xb14   :  { %1524 = vmatpush3.bf16.msra.mxu1 %v1734_v14 }
 0xbe2   :  { %v610_v43 = vpop.f32.mrb[4].mxu1 }
 0xbe3   :  { %v614_v44 = vadd.f32 %v610_v43, %v538_v42  ;;  %v1430_v45 = vpop.f32.mrb[5].mxu1 }
 0xbe5   :  { %1585 = vtanh.f32 %v614_v44  ;;  %v1301_v47 = vmul.f32 -1.442695, %v614_v44 }
 0xbe7   :  { %1587 = vpow2.f32 %v1301_v47 }
 0xbef   :  { %v1586_v46 = vpop.eup %1585 }
 0xbf0   :  { %624 = vrot.lane.b32.xlu1 %v1586_v46, %s1644_s4 }
 0xbf1   :  { %v1588_v48 = vpop.eup %1587 }
 0xbf2   :  { %v618_v49 = vadd.f32 1.0, %v1588_v48 }
 0xbf4   :  { %1589 = vrcp.f32 %v618_v49 }
 0xbfe   :  { %v1590_v50 = vpop.eup %1589 }
 0xbff   :  { %v622_v53 = vmul.f32 %v1590_v50, %v531_v35 }
 0xc62   :  { %v625_v51 = vpop.permute.xlu1 %624 }
 0xc63   :  { %v627_v52 = vmul.f32 %v1590_v50, %v625_v51 }
 0xc65   :  { %629 = vrot.lane.b32.xlu0 %v627_v52, %s1645_s5 }
 0xcd7   :  { %v630_v54 = vpop.permute.xlu0 %629 }
 0xcd8   :  { %v632_v55 = vadd.f32 %v630_v54, %v622_v53  ;;  %v964_v53 = vld [vmem:[%s1993_s6] sm:$0xff]  ;;  %v965_v54 = vld [vmem:[%s1993_s6 + $0x8] sm:$0xff] }
 0xcda   :  { %1591 = vtanh.f32 %v632_v55 }
 0xce4   :  { %v1592_v56 = vpop.eup %1591 }
 0xce5   :  { %635 = vrot.lane.b32.xlu1 %v1592_v56, %s1644_s4  ;;  %v967_v56 = vld [vmem:[%s1993_s6 + $0x18] sm:$0xff] }
 0xd57   :  { %v636_v57 = vpop.permute.xlu1 %635 }
 0xd58   :  { %v1822_v58 = vmul.f32 %v1590_v50, %v636_v57 }
 0xd5a   :  { %641 = vrot.lane.b32.xlu0 %v1822_v58, %s1645_s5 }
 0xdcc   :  { %v642_v59 = vpop.permute.xlu0 %641 }
 0xdcd   :  { %1440 = vmatmul.mubr.msk.f32.vlgmr.msra.gmra.mrb[6].mxu0 %vm42_vm0, %v642_v59 }
 0xdce   :  { %1527 = vmatpush3.bf16.msra.mxu0 %v1728_v12  ;;  %1461 = vmatprep.mubr.msk.f32.mxu0 %vm1642_vm1, %v1643_v4 }
 0xdcf   :  { %1528 = vmatprep.subr.bf16.mxu0 %v1641_v3 }
 0xdd2   :  { %1530 = vmatpush3.bf16.msra.mxu0 %v1734_v14 }
 0xea0   :  { %v711_v61 = vpop.f32.mrb[6].mxu0 }
 0xea1   :  { %v715_v62 = vadd.f32 %v711_v61, %v639_v60  ;;  %v1441_v63 = vpop.f32.mrb[7].mxu0 }
 0xea3   :  { %1593 = vtanh.f32 %v715_v62  ;;  %v1303_v1 = vmul.f32 -1.442695, %v715_v62 }
 0xea5   :  { %1595 = vpow2.f32 %v1303_v1 }
 0xead   :  { %v1594_v0 = vpop.eup %1593 }
 0xeae   :  { %725 = vrot.lane.b32.xlu1 %v1594_v0, %s1644_s4  ;;  %v1308_v0 = vld [vmem:[%s1994_s7] ss:$0 sm:$0xff]  ;;  %s1648_s7 = smov 116  }
 0xeaf   :  { %v1596_v2 = vpop.eup %1595 }
 0xeb0   :  { %v719_v5 = vadd.f32 1.0, %v1596_v2 }
 0xeb2   :  { %1597 = vrcp.f32 %v719_v5 }
 0xebc   :  { %v1598_v12 = vpop.eup %1597 }
 0xebd   :  { %v723_v3 = vmul.f32 %v1598_v12, %v632_v55  ;;  %v1531_v55 = vpack.c.bf16 %v965_v54, %v964_v53 }
 0xebf   :  { %1532 = vmatprep.subr.bf16.mxu1 %v1531_v55 }
 0xf20   :  { %v726_v6 = vpop.permute.xlu1 %725 }
 0xf21   :  { %v728_v7 = vmul.f32 %v1598_v12, %v726_v6 }
 0xf23   :  { %730 = vrot.lane.b32.xlu0 %v728_v7, %s1645_s5 }
 0xf95   :  { %v731_v14 = vpop.permute.xlu0 %730 }
 0xf96   :  { %v733_v8 = vadd.f32 %v731_v14, %v723_v3 }
 0xf98   :  { %1599 = vtanh.f32 %v733_v8 }
 0xfa2   :  { %v1600_v9 = vpop.eup %1599 }
 0xfa3   :  { %736 = vrot.lane.b32.xlu1 %v1600_v9, %s1644_s4 }
0x1015   :  { %v737_v10 = vpop.permute.xlu1 %736 }
0x1016   :  { %v739_v11 = vmul.f32 %v1598_v12, %v737_v10 }
0x1018   :  { %742 = vrot.lane.b32.xlu0 %v739_v11, %s1645_s5  ;;  %v948_v30 = vrot.slane %v739_v11, 6 }
0x101a   :  { %v961_v34 = vsel %vm955_vm2, %v1822_v58, %v948_v30 }
0x108a   :  { %v743_v13 = vpop.permute.xlu0 %742 }
0x108b   :  { %1451 = vmatmul.mubr.msk.f32.vlgmr.msra.gmra.mrb[6].mxu1 %vm42_vm0, %v743_v13 }
0x108c   :  { %1534 = vmatpush3.bf16.msra.mxu1 %v1531_v55 }
0x115e   :  { %v812_v16 = vpop.f32.mrb[6].mxu1 }
0x115f   :  { %v816_v17 = vadd.f32 %v812_v16, %v740_v15  ;;  %v1452_v18 = vpop.f32.mrb[7].mxu1 }
0x1161   :  { %1601 = vtanh.f32 %v816_v17  ;;  %v1305_v20 = vmul.f32 -1.442695, %v816_v17 }
0x1163   :  { %1603 = vpow2.f32 %v1305_v20 }
0x116b   :  { %v1602_v19 = vpop.eup %1601 }
0x116c   :  { %826 = vrot.lane.b32.xlu1 %v1602_v19, %s1644_s4 }
0x116d   :  { %v1604_v21 = vpop.eup %1603 }
0x116e   :  { %v820_v22 = vadd.f32 1.0, %v1604_v21 }
0x1170   :  { %1605 = vrcp.f32 %v820_v22 }
0x117a   :  { %v1606_v23 = vpop.eup %1605 }
0x117b   :  { %v824_v26 = vmul.f32 %v1606_v23, %v733_v8 }
0x11de   :  { %v827_v24 = vpop.permute.xlu1 %826 }
0x11df   :  { %v829_v25 = vmul.f32 %v1606_v23, %v827_v24 }
0x11e1   :  { %831 = vrot.lane.b32.xlu0 %v829_v25, %s1645_s5 }
0x1253   :  { %v832_v27 = vpop.permute.xlu0 %831 }
0x1254   :  { %v834_v28 = vadd.f32 %v832_v27, %v824_v26 }
0x1256   :  { %1607 = vtanh.f32 %v834_v28 }
0x1260   :  { %v1608_v29 = vpop.eup %1607 }
0x1261   :  { %837 = vrot.lane.b32.xlu1 %v1608_v29, %s1644_s4 }
0x12d3   :  { %v838_v31 = vpop.permute.xlu1 %837 }
0x12d4   :  { %v840_v32 = vmul.f32 %v1606_v23, %v838_v31 }
0x12d6   :  { %v950_v33 = vrot.slane %v840_v32, 4  ;;  %843 = vrot.lane.b32.xlu0 %v840_v32, %s1645_s5 }
0x12d8   :  { %v962_v35 = vsel %vm957_vm3, %v961_v34, %v950_v33 }
0x1348   :  { %v844_v36 = vpop.permute.xlu0 %843 }
0x1349   :  { %1462 = vmatmul.mubr.msk.f32.vlgmr.msra.gmra.mrb[8].mxu0 %vm42_vm0, %v844_v36 }
0x141c   :  { %v913_v38 = vpop.f32.mrb[8].mxu0 }
0x141d   :  { %v917_v39 = vadd.f32 %v913_v38, %v841_v37  ;;  %v1463_v41 = vpop.f32.mrb[9].mxu0 }
0x141f   :  { %1609 = vtanh.f32 %v917_v39  ;;  %v1307_v43 = vmul.f32 -1.442695, %v917_v39 }
0x1421   :  { %1611 = vpow2.f32 %v1307_v43 }
0x1429   :  { %v1610_v42 = vpop.eup %1609 }
0x142a   :  { %927 = vrot.lane.b32.xlu1 %v1610_v42, %s1644_s4 }
0x142b   :  { %v1612_v44 = vpop.eup %1611 }
0x142c   :  { %v921_v45 = vadd.f32 1.0, %v1612_v44 }
0x142e   :  { %1613 = vrcp.f32 %v921_v45 }
0x1438   :  { %v1614_v46 = vpop.eup %1613 }
0x1439   :  { %v925_v49 = vmul.f32 %v1614_v46, %v834_v28 }
0x149c   :  { %v928_v47 = vpop.permute.xlu1 %927 }
0x149d   :  { %v930_v48 = vmul.f32 %v1614_v46, %v928_v47 }
0x149f   :  { %932 = vrot.lane.b32.xlu0 %v930_v48, %s1645_s5 }
0x14a3   :  { %977 = vrot.lane.b32.xlu0 %v1811_v40, %s1645_s5  ;;  %v966_v40 = vld [vmem:[%s1993_s6 + $0x10] sm:$0xff] }
0x14a4   :  { %v1535_v57 = vpack.c.bf16 %v967_v56, %v966_v40 }
0x14a6   :  { %1536 = vmatprep.subr.bf16.mxu1 %v1535_v57 }
0x14a7   :  { %1538 = vmatpush3.bf16.msra.mxu1 %v1535_v57 }
0x1511   :  { %v933_v50 = vpop.permute.xlu0 %932 }
0x1512   :  { %v1849_v51 = vadd.f32 %v933_v50, %v925_v49 }
0x1514   :  { %1615 = vtanh.f32 %v1849_v51 }
0x1515   :  { %v978_v52 = vpop.permute.xlu0 %977 }
0x1516   :  { %1472 = vmatprep.mubr.msk.f32.mxu1 %vm42_vm0, %v978_v52 }
0x151e   :  { %v1616_v58 = vpop.eup %1615 }
0x151f   :  { %938 = vrot.lane.b32.xlu1 %v1616_v58, %s1644_s4 }
0x1591   :  { %v939_v59 = vpop.permute.xlu1 %938 }
0x1592   :  { %v1866_v60 = vmul.f32 %v1614_v46, %v939_v59 }
0x1594   :  { %v953_v61 = vrot.slane %v1866_v60, 2 }
0x1596   :  { %v963_v62 = vsel %vm959_vm4, %v962_v35, %v953_v61 }
0x1597   :  { %979 = vrot.lane.b32.xlu1 %v963_v62, %s1645_s5 }
0x1609   :  { %v980_v63 = vpop.permute.xlu1 %979 }
0x160a   :  { %1473 = vmatmul.mubr.msk.f32.vlgmr.msra.gmra.mrb[8].mxu1 %vm42_vm0, %v980_v63 }
0x16dd   :  { %v1474_v1 = vpop.f32.mrb[8].mxu1 }
0x16de   :  { %v1875_v2 = vadd.f32 %v1474_v1, %v1308_v0  ;;  %v1051_v5 = vpop.f32.mrb[9].mxu1 }
0x16df   :  { %v1877_v12 = vadd.f32 %v1308_v0, %v1051_v5 }
0x16e0   :  { %1064 = vrot.lane.b32.xlu1 %v1875_v2, %s1646_s14  ;;  %v1218_v7 = vsel %vm1214_vm5, %v1875_v2, -inf }
0x16e1   :  { %1062 = vrot.lane.b32.xlu0 %v1877_v12, %s1646_s14  ;;  %v1215_v6 = vsel %vm1214_vm5, %v1877_v12, -inf }
0x16e4   :  { %1072 = vrot.lane.b32.xlu1 %v1875_v2, %s1647_s15 }
0x16e5   :  { %1070 = vrot.lane.b32.xlu0 %v1877_v12, %s1647_s15 }
0x16e8   :  { %1080 = vrot.lane.b32.xlu1 %v1875_v2, %s1648_s7 }
0x16e9   :  { %1078 = vrot.lane.b32.xlu0 %v1877_v12, %s1648_s7 }
0x16ec   :  { %1088 = vrot.lane.b32.xlu1 %v1875_v2, %s1649_s16 }
0x16ed   :  { %1086 = vrot.lane.b32.xlu0 %v1877_v12, %s1649_s16 }
0x170c   :  { %1216 = vmax.xlane.f32.xlu0 %v1215_v6 }
0x1710   :  { %1219 = vmax.xlane.f32.xlu1 %v1218_v7 }
0x1752   :  { %v1065_v3 = vpop.permute.xlu1 %1064 }
0x1753   :  { %v1063_v14 = vpop.permute.xlu0 %1062  ;;  %v1069_v10 = vmax.f32 %v1875_v2, %v1065_v3 }
0x1754   :  { %v1068_v11 = vmax.f32 %v1877_v12, %v1063_v14 }
0x1756   :  { %v1073_v8 = vpop.permute.xlu1 %1072 }
0x1757   :  { %v1071_v9 = vpop.permute.xlu0 %1070  ;;  %v1077_v15 = vmax.f32 %v1069_v10, %v1073_v8 }
0x1758   :  { %v1076_v17 = vmax.f32 %v1068_v11, %v1071_v9 }
0x175a   :  { %v1081_v13 = vpop.permute.xlu1 %1080 }
0x175b   :  { %v1079_v16 = vpop.permute.xlu0 %1078  ;;  %v1085_v18 = vmax.f32 %v1077_v15, %v1081_v13 }
0x175c   :  { %v1084_v19 = vmax.f32 %v1076_v17, %v1079_v16 }
0x175e   :  { %v1089_v20 = vpop.permute.xlu1 %1088 }
0x175f   :  { %v1899_v21 = vmax.f32 %v1085_v18, %v1089_v20  ;;  %v1087_v22 = vpop.permute.xlu0 %1086 }
0x1760   :  { %v1901_v23 = vmax.f32 %v1084_v19, %v1087_v22 }
0x1761   :  { %1098 = vrot.lane.b32.xlu1 %v1899_v21, %s1650_s17 }
0x1762   :  { %1096 = vrot.lane.b32.xlu0 %v1901_v23, %s1650_s17 }
0x1765   :  { %1104 = vrot.lane.b32.xlu1 %v1899_v21, %s1651_s18 }
0x1766   :  { %1102 = vrot.lane.b32.xlu0 %v1901_v23, %s1651_s18 }
0x1769   :  { %1110 = vrot.lane.b32.xlu1 %v1899_v21, %s1652_s19 }
0x176a   :  { %1108 = vrot.lane.b32.xlu0 %v1901_v23, %s1652_s19 }
0x176d   :  { %1116 = vrot.lane.b32.xlu1 %v1899_v21, %s1653_s20 }
0x176e   :  { %1114 = vrot.lane.b32.xlu0 %v1901_v23, %s1653_s20 }
0x1799   :  { %v1217_v24 = vpop.xlane.xlu0 %1216 }
0x179a   :  { %v1221_v25 = vsub.f32 %v1877_v12, %v1217_v24  ;;  %v1311_v24 = vmul.f32 -1.442695, %v1877_v12 }
0x179c   :  { %v1223_v26 = vmul.f32 1.442695, %v1221_v25 }
0x179d   :  { %v1220_v27 = vpop.xlane.xlu1 %1219 }
0x179e   :  { %1617 = vpow2.f32 %v1223_v26  ;;  %v1222_v28 = vsub.f32 %v1875_v2, %v1220_v27 }
0x17a0   :  { %v1225_v29 = vmul.f32 1.442695, %v1222_v28 }
0x17a2   :  { %1619 = vpow2.f32 %v1225_v29 }
0x17a8   :  { %v1921_v30 = vpop.eup %1617 }
0x17a9   :  { %1229 = vrot.lane.b32.xlu0 %v1921_v30, %s1654_s3 }
0x17ac   :  { %v1924_v31 = vpop.eup %1619 }
0x17ad   :  { %1231 = vrot.lane.b32.xlu1 %v1924_v31, %s1654_s3 }
0x17d3   :  { %v1099_v32 = vpop.permute.xlu1 %1098 }
0x17d4   :  { %v1097_v33 = vpop.permute.xlu0 %1096  ;;  %v1122_v38 = vsel %vm1120_vm6, %v1899_v21, %v1099_v32 }
0x17d5   :  { %v1121_v39 = vsel %vm1120_vm6, %v1901_v23, %v1097_v33 }
0x17d7   :  { %v1105_v34 = vpop.permute.xlu1 %1104 }
0x17d8   :  { %v1103_v35 = vpop.permute.xlu0 %1102  ;;  %v1125_v41 = vsel %vm1123_vm7, %v1122_v38, %v1105_v34 }
0x17d9   :  { %v1124_v42 = vsel %vm1123_vm7, %v1121_v39, %v1103_v35 }
0x17db   :  { %v1111_v36 = vpop.permute.xlu1 %1110 }
0x17dc   :  { %v1109_v37 = vpop.permute.xlu0 %1108  ;;  %v1128_v43 = vsel %vm1126_vm8, %v1125_v41, %v1111_v36 }
0x17dd   :  { %v1127_v45 = vsel %vm1126_vm8, %v1124_v42, %v1109_v37 }
0x17df   :  { %v1117_v44 = vpop.permute.xlu1 %1116 }
0x17e0   :  { %v1131_v46 = vsel %vm1129_vm9, %v1128_v43, %v1117_v44  ;;  %v1115_v47 = vpop.permute.xlu0 %1114 }
0x17e1   :  { %v1133_v48 = vsub.f32 %v1875_v2, %v1131_v46  ;;  %v1130_v49 = vsel %vm1129_vm9, %v1127_v45, %v1115_v47 }
0x17e2   :  { %v1132_v50 = vsub.f32 %v1877_v12, %v1130_v49 }
0x17e3   :  { %v1136_v52 = vmul.f32 1.442695, %v1133_v48 }
0x17e4   :  { %v1134_v53 = vmul.f32 1.442695, %v1132_v50 }
0x17e5   :  { %1621 = vpow2.f32 %v1136_v52 }
0x17e6   :  { %1623 = vpow2.f32 %v1134_v53 }
0x17ef   :  { %v1622_v54 = vpop.eup %1621 }
0x17f0   :  { %v1624_v40 = vpop.eup %1623  ;;  %1142 = vrot.lane.b32.xlu1 %v1622_v54, %s1646_s14 }
0x17f1   :  { %1140 = vrot.lane.b32.xlu0 %v1624_v40, %s1646_s14 }
0x17f4   :  { %1150 = vrot.lane.b32.xlu1 %v1622_v54, %s1647_s15 }
0x17f5   :  { %1148 = vrot.lane.b32.xlu0 %v1624_v40, %s1647_s15 }
0x17f8   :  { %1158 = vrot.lane.b32.xlu1 %v1622_v54, %s1648_s7 }
0x17f9   :  { %1156 = vrot.lane.b32.xlu0 %v1624_v40, %s1648_s7 }
0x17fc   :  { %1166 = vrot.lane.b32.xlu1 %v1622_v54, %s1649_s16 }
0x17fd   :  { %1164 = vrot.lane.b32.xlu0 %v1624_v40, %s1649_s16 }
0x1801   :  { %1258 = vrot.lane.b32.xlu0 %v1866_v60, %s1645_s5 }
0x181b   :  { %v1230_v55 = vpop.permute.xlu0 %1229 }
0x181c   :  { %v1236_v57 = vsel %vm1235_vm10, %v1230_v55, 0.0 }
0x181f   :  { %v1232_v56 = vpop.permute.xlu1 %1231 }
0x1820   :  { %1237 = vadd.xlane.f32.xlu1 %v1236_v57  ;;  %v1239_v58 = vsel %vm1235_vm10, %v1232_v56, 0.0 }
0x1821   :  { %1240 = vadd.xlane.f32.xlu0 %v1239_v58 }
0x1862   :  { %v1143_v59 = vpop.permute.xlu1 %1142 }
0x1863   :  { %v1141_v61 = vpop.permute.xlu0 %1140  ;;  %v1147_v0 = vadd.f32 %v1622_v54, %v1143_v59 }
0x1864   :  { %v1146_v1 = vadd.f32 %v1624_v40, %v1141_v61 }
0x1866   :  { %v1151_v62 = vpop.permute.xlu1 %1150 }
0x1867   :  { %v1149_v63 = vpop.permute.xlu0 %1148  ;;  %v1155_v6 = vadd.f32 %v1151_v62, %v1147_v0 }
0x1868   :  { %v1154_v3 = vadd.f32 %v1149_v63, %v1146_v1 }
0x186a   :  { %v1159_v5 = vpop.permute.xlu1 %1158 }
0x186b   :  { %v1157_v7 = vpop.permute.xlu0 %1156  ;;  %v1163_v14 = vadd.f32 %v1159_v5, %v1155_v6 }
0x186c   :  { %v1162_v8 = vadd.f32 %v1157_v7, %v1154_v3 }
0x186e   :  { %v1167_v60 = vpop.permute.xlu1 %1166 }
0x186f   :  { %v1171_v9 = vadd.f32 %v1167_v60, %v1163_v14  ;;  %v1165_v10 = vpop.permute.xlu0 %1164 }
0x1870   :  { %v1170_v11 = vadd.f32 %v1165_v10, %v1162_v8 }
0x1871   :  { %1625 = vlog2.f32 %v1171_v9 }
0x1872   :  { %1627 = vlog2.f32 %v1170_v11 }
0x1873   :  { %v1259_v20 = vpop.permute.xlu0 %1258 }
0x1874   :  { %v1261_v22 = vsel %vm42_vm0, %v1259_v20, %v1849_v51 }
0x187b   :  { %v1626_v13 = vpop.eup %1625 }
0x187c   :  { %v1628_v15 = vpop.eup %1627  ;;  %v1175_v16 = vmul.f32 0.6931472, %v1626_v13 }
0x187d   :  { %v1173_v18 = vmul.f32 0.6931472, %v1628_v15 }
0x187e   :  { %v1177_v17 = vadd.f32 %v1175_v16, %v1899_v21  ;;  %v1262_v21 = vsel %vm955_vm2, %v1261_v22, 0.0 }
0x187f   :  { %v1176_v19 = vadd.f32 %v1173_v18, %v1901_v23  ;;  %v1312_v23 = vmul.f32 -1.442695, %v1875_v2 }
0x1880   :  { %1188 = vrot.lane.b32.xlu0 %v1177_v17, %s1651_s18  ;;  %1182 = vrot.lane.b32.xlu1 %v1177_v17, %s1650_s17 }
0x1881   :  { %1629 = vpow2.f32 %v1312_v23 }
0x1882   :  { %1631 = vpow2.f32 %v1311_v24 }
0x1884   :  { %1194 = vrot.lane.b32.xlu0 %v1177_v17, %s1652_s19  ;;  %1186 = vrot.lane.b32.xlu1 %v1176_v19, %s1651_s18 }
0x1888   :  { %1192 = vrot.lane.b32.xlu1 %v1176_v19, %s1652_s19  ;;  %1180 = vrot.lane.b32.xlu0 %v1176_v19, %s1650_s17 }
0x188b   :  { %v1630_v51 = vpop.eup %1629 }
0x188c   :  { %1198 = vrot.lane.b32.xlu1 %v1176_v19, %s1653_s20  ;;  %1200 = vrot.lane.b32.xlu0 %v1177_v17, %s1653_s20  ;;  %v1632_v27 = vpop.eup %1631  ;;  %v1253_v32 = vadd.f32 1.0, %v1630_v51 }
0x188d   :  { %v1252_v33 = vadd.f32 1.0, %v1632_v27 }
0x1890   :  { %1265 = vrot.lane.b32.xlu1 %v1262_v21, %s1644_s4  ;;  %1267 = vrot.lane.b32.xlu0 %v1643_v4, %s1644_s4 }
0x18ad   :  { %v1238_v25 = vpop.xlane.xlu1 %1237 }
0x18ae   :  { %v1241_v26 = vpop.xlane.xlu0 %1240  ;;  %1633 = vrcp.f32 %v1238_v25 }
0x18af   :  { %1635 = vrcp.f32 %v1241_v26 }
0x18b0   :  { %1637 = vrcp.f32 %v1253_v32 }
0x18b1   :  { %1639 = vrcp.f32 %v1252_v33 }
0x18b8   :  { %v1634_v41 = vpop.eup %1633 }
0x18b9   :  { %v1636_v44 = vpop.eup %1635  ;;  %v1243_v53 = vmul.f32 %v1634_v41, %v1921_v30 }
0x18ba   :  { %v1245_v54 = vmul.f32 %v1636_v44, %v1924_v31  ;;  %v1638_v40 = vpop.eup %1637 }
0x18bb   :  { %v1640_v58 = vpop.eup %1639 }
0x18f2   :  { %v1183_v28 = vpop.permute.xlu1 %1182  ;;  %v1189_v29 = vpop.permute.xlu0 %1188 }
0x18f3   :  { %v1205_v4 = vsel %vm1120_vm6, %v1177_v17, %v1183_v28 }
0x18f4   :  { %v1207_v42 = vsel %vm1123_vm7, %v1205_v4, %v1189_v29 }
0x18f6   :  { %v1187_v34 = vpop.permute.xlu1 %1186  ;;  %v1195_v35 = vpop.permute.xlu0 %1194 }
0x18f7   :  { %v1209_v45 = vsel %vm1126_vm8, %v1207_v42, %v1195_v35 }
0x18fa   :  { %v1193_v36 = vpop.permute.xlu1 %1192  ;;  %v1181_v37 = vpop.permute.xlu0 %1180 }
0x18fb   :  { %v1204_v38 = vsel %vm1120_vm6, %v1176_v19, %v1181_v37 }
0x18fc   :  { %v1206_v39 = vsel %vm1123_vm7, %v1204_v38, %v1187_v34 }
0x18fd   :  { %v1208_v43 = vsel %vm1126_vm8, %v1206_v39, %v1193_v36 }
0x18fe   :  { %v1199_v46 = vpop.permute.xlu1 %1198  ;;  %v1201_v47 = vpop.permute.xlu0 %1200 }
0x18ff   :  { %v1210_v48 = vsel %vm1129_vm9, %v1208_v43, %v1199_v46  ;;  %v1211_v49 = vsel %vm1129_vm9, %v1209_v45, %v1201_v47 }
0x1900   :  { %v1212_v50 = vsub.f32 %v1877_v12, %v1210_v48  ;;  %v1213_v52 = vsub.f32 %v1875_v2, %v1211_v49 }
0x1902   :  { %v1272_v55 = vsel %vm1271_vm11, %v1212_v50, %v1877_v12  ;;  %v1273_v56 = vsel %vm1271_vm11, %v1213_v52, %v1875_v2  ;;  %v1268_v57 = vpop.permute.xlu0 %1267  ;;  %v1266_v62 = vpop.permute.xlu1 %1265 }
0x1903   :  { %v1275_v59 = vsel %vm1274_vm12, %v1272_v55, %v1243_v53  ;;  %v1276_v61 = vsel %vm1274_vm12, %v1273_v56, %v1245_v54 }
0x1904   :  { %v1278_v63 = vsel %vm1277_vm13, %v1275_v59, %v1640_v58  ;;  %v1279_v0 = vsel %vm1277_vm13, %v1276_v61, %v1638_v40 }
0x1905   :  { %v1281_v1 = vsel %vm1280_vm14, %v1278_v63, %v1266_v62  ;;  %v1282_v5 = vsel %vm1280_vm14, %v1279_v0, %v1268_v57 }
0x1906   :  { %1283 = vst [vmem:[%s1995_s8] sm:$0xff] %v1281_v1  ;;  %1284 = vst [vmem:[%s1995_s8 + $0x8] sm:$0xff] %v1282_v5 }

</bundles_post_ra>
